<compile_context>
chip_gen: v7x
topology: tpu7x:2x2x1
jax: 0.10.0
libtpu: 0.0.40
codegen_flags: <defaults>
</compile_context>

<pallas_src>
import jax
import jax.numpy as jnp
from jax.experimental import pallas as pl
from jax.experimental.pallas import tpu as pltpu

LANE = 128  # TPU lane width; all layer outputs are padded to this many columns.


def _round_up(x, m):
    return ((x + m - 1) // m) * m


def _mlp_kernel(x_ref,
                w1_ref, b1_ref,
                w2_ref, b2_ref,
                w3_ref, b3_ref,
                w4_ref, b4_ref,
                o_ref):
    """One batch-block of the fused 4-layer MLP (all layers lane-padded to 128)."""

    def dense_sigmoid(h, w_ref, b_ref):
        y = jnp.dot(h, w_ref[...], preferred_element_type=jnp.float32)
        y = y + b_ref[...]                      # (1, 128) bias broadcasts over rows
        # sigmoid(y) == 0.5 * (tanh(y/2) + 1): a single EUP op per element instead
        # of exp + reciprocal; the 0.5 mul/add ride the VALU slots for free.
        return 0.5 * (jnp.tanh(0.5 * y) + 1.0)

    h = x_ref[...]                              # (B_blk, input_size), bf16 or f32
    h = dense_sigmoid(h, w1_ref, b1_ref)        # (B_blk, 128) f32
    h = dense_sigmoid(h, w2_ref, b2_ref)
    h = dense_sigmoid(h, w3_ref, b3_ref)
    h = dense_sigmoid(h, w4_ref, b4_ref)
    o_ref[...] = h.astype(o_ref.dtype)          # lane-dense (B_blk, 128) store


def mlp_forward(x, params, *, block_batch=512, x_dtype=jnp.bfloat16):
    """Forward pass equivalent to the PyTorch NerualNetwork.

    x:      (B, input_size) float32
    params: list of 4 (W, b) pairs with W stored as (in_features, out_features)
            — the transpose of nn.Linear's (out, in) — and b (out_features,).
    Returns: (B, 1) float32.
    """
    B, input_size = x.shape

    # --- batch tiling: large blocks, batch padded to a multiple of the block ---
    b_blk = min(block_batch, _round_up(B, 8))
    B_pad = _round_up(B, b_blk)
    if B_pad != B:
        x = jnp.pad(x, ((0, B_pad - B), (0, 0)))
    # x is the only HBM stream that scales with batch; bf16 halves its traffic.
    x = x.astype(x_dtype)

    # --- lane-pad the (tiny) weights and biases to 128 output columns ---
    packed = []
    prev = input_size                    # layer-1 in-features = true x width
    for (w, b) in params:
        fan_in, fan_out = w.shape
        w_p = jnp.zeros((prev, LANE), jnp.float32).at[:fan_in, :fan_out].set(
            w.astype(jnp.float32))
        b_p = jnp.zeros((1, LANE), jnp.float32).at[0, :fan_out].set(
            b.astype(jnp.float32))
        packed.append((w_p, b_p))
        prev = LANE                      # layers 2..4 consume the padded 128-wide slab

    grid = (B_pad // b_blk,)

    in_specs = [pl.BlockSpec((b_blk, input_size), lambda i: (i, 0))]
    flat_args = [x]
    for (w_p, b_p) in packed:
        # Constant index_map -> weights/biases stay resident in VMEM across steps.
        in_specs.append(pl.BlockSpec(w_p.shape, lambda i: (0, 0)))
        in_specs.append(pl.BlockSpec(b_p.shape, lambda i: (0, 0)))
        flat_args.append(w_p)
        flat_args.append(b_p)

    out = pl.pallas_call(
        _mlp_kernel,
        grid=grid,
        in_specs=in_specs,
        out_specs=pl.BlockSpec((b_blk, LANE), lambda i: (i, 0)),
        out_shape=jax.ShapeDtypeStruct((B_pad, LANE), jnp.float32),
        compiler_params=pltpu.CompilerParams(
            dimension_semantics=("parallel",),   # v7x: shard batch across both TCs
        ),
    )(*flat_args)

    # Only column 0 / the first B rows are real; the slice is free vs kernel time.
    return out[:B, :1]


def init_params(key, input_size, hidden1=30, hidden2=20, hidden3=10):
    """Deterministic init mimicking nn.Linear's U(-1/sqrt(fan_in), 1/sqrt(fan_in))."""
    dims = [(input_size, hidden1), (hidden1, hidden2), (hidden2, hidden3), (hidden3, 1)]
    params = []
    for (fan_in, fan_out) in dims:
        key, kw, kb = jax.random.split(key, 3)
        bound = 1.0 / float(fan_in) ** 0.5
        # nn.Linear stores weight as (out, in); we store the transpose (in, out).
        w = jax.random.uniform(kw, (fan_in, fan_out), jnp.float32, -bound, bound)
        b = jax.random.uniform(kb, (fan_out,), jnp.float32, -bound, bound)
        params.append((w, b))
    return params


def reference_forward(x, params):
    h = x
    for (w, b) in params:
        h = jax.nn.sigmoid(h @ w + b)
    return h


if __name__ == "__main__":
    key = jax.random.PRNGKey(0)
    key, kx = jax.random.split(key)

    batch, input_size = 64, 16
    x = jax.random.normal(kx, (batch, input_size), jnp.float32)
    params = init_params(key, input_size)

    ref = reference_forward(x, params)

    # f32 input path: should match the pure-JAX reference tightly.
    out_f32 = mlp_forward(x, params, block_batch=32, x_dtype=jnp.float32)
    jax.block_until_ready(out_f32)
    assert out_f32.shape == (batch, 1)
    assert jnp.allclose(out_f32, ref, atol=1e-5, rtol=1e-5), "f32 mismatch vs reference"

    # Default bf16 x-stream path (halves HBM traffic at large batch): looser tolerance.
    out_bf16 = mlp_forward(x, params, block_batch=32)
    jax.block_until_ready(out_bf16)
    assert out_bf16.shape == (batch, 1)
    assert jnp.allclose(out_bf16, ref, atol=2e-2, rtol=2e-2), "bf16 mismatch vs reference"

    print("KERNEL_OK")
</pallas_src>

<mosaic_0001>
module attributes {stable_mosaic.version = 11 : i64} {
  func.func @_mlp_kernel(%arg0: i32, %arg1: memref<32x16xf32, #tpu.memory_space<vmem>>, %arg2: memref<16x128xf32, #tpu.memory_space<vmem>>, %arg3: memref<1x128xf32, #tpu.memory_space<vmem>>, %arg4: memref<128x128xf32, #tpu.memory_space<vmem>>, %arg5: memref<1x128xf32, #tpu.memory_space<vmem>>, %arg6: memref<128x128xf32, #tpu.memory_space<vmem>>, %arg7: memref<1x128xf32, #tpu.memory_space<vmem>>, %arg8: memref<128x128xf32, #tpu.memory_space<vmem>>, %arg9: memref<1x128xf32, #tpu.memory_space<vmem>>, %arg10: memref<32x128xf32, #tpu.memory_space<vmem>>) attributes {dimension_semantics = [#tpu.dimension_semantics<parallel>], iteration_bounds = array<i64: 2>, scalar_prefetch = 0 : i64, scratch_operands = 0 : i64, tpu.core_type = #tpu.core_type<tc>, window_params = [{transform_indices = @transform_0, window_bounds = array<i64: 32, 16>}, {pipeline_mode = #tpu.pipeline_mode<synchronous>, transform_indices = @transform_1, window_bounds = array<i64: 16, 128>}, {pipeline_mode = #tpu.pipeline_mode<synchronous>, transform_indices = @transform_2, window_bounds = array<i64: 1, 128>}, {pipeline_mode = #tpu.pipeline_mode<synchronous>, transform_indices = @transform_3, window_bounds = array<i64: 128, 128>}, {pipeline_mode = #tpu.pipeline_mode<synchronous>, transform_indices = @transform_4, window_bounds = array<i64: 1, 128>}, {pipeline_mode = #tpu.pipeline_mode<synchronous>, transform_indices = @transform_5, window_bounds = array<i64: 128, 128>}, {pipeline_mode = #tpu.pipeline_mode<synchronous>, transform_indices = @transform_6, window_bounds = array<i64: 1, 128>}, {pipeline_mode = #tpu.pipeline_mode<synchronous>, transform_indices = @transform_7, window_bounds = array<i64: 128, 128>}, {pipeline_mode = #tpu.pipeline_mode<synchronous>, transform_indices = @transform_8, window_bounds = array<i64: 1, 128>}, {transform_indices = @transform_9, window_bounds = array<i64: 32, 128>}]} {
    %c0 = arith.constant 0 : index
    %c0_0 = arith.constant 0 : index
    %0 = vector.load %arg1[%c0, %c0_0] : memref<32x16xf32, #tpu.memory_space<vmem>>, vector<32x16xf32>
    %c0_1 = arith.constant 0 : index
    %c0_2 = arith.constant 0 : index
    %1 = vector.load %arg2[%c0_1, %c0_2] : memref<16x128xf32, #tpu.memory_space<vmem>>, vector<16x128xf32>
    %cst = arith.constant dense<0.000000e+00> : vector<32x128xf32>
    %2 = tpu.matmul %0, %1, %cst {dimension_numbers = #tpu.dot_dimension_numbers<[1], [0], [0], [1], [0, 0, 1, 1], [], []>} : vector<32x16xf32>, vector<16x128xf32>, vector<32x128xf32> -> vector<32x128xf32>
    %c0_3 = arith.constant 0 : index
    %c0_4 = arith.constant 0 : index
    %3 = vector.load %arg3[%c0_3, %c0_4] : memref<1x128xf32, #tpu.memory_space<vmem>>, vector<1x128xf32>
    %4 = vector.broadcast %3 : vector<1x128xf32> to vector<32x128xf32>
    %5 = arith.addf %2, %4 : vector<32x128xf32>
    %cst_5 = arith.constant 5.000000e-01 : f32
    %6 = vector.broadcast %cst_5 : f32 to vector<32x128xf32>
    %7 = arith.mulf %6, %5 : vector<32x128xf32>
    %8 = math.tanh %7 : vector<32x128xf32>
    %cst_6 = arith.constant 1.000000e+00 : f32
    %9 = vector.broadcast %cst_6 : f32 to vector<32x128xf32>
    %10 = arith.addf %8, %9 : vector<32x128xf32>
    %cst_7 = arith.constant 5.000000e-01 : f32
    %11 = vector.broadcast %cst_7 : f32 to vector<32x128xf32>
    %12 = arith.mulf %11, %10 : vector<32x128xf32>
    %c0_8 = arith.constant 0 : index
    %c0_9 = arith.constant 0 : index
    %13 = vector.load %arg4[%c0_8, %c0_9] : memref<128x128xf32, #tpu.memory_space<vmem>>, vector<128x128xf32>
    %cst_10 = arith.constant dense<0.000000e+00> : vector<32x128xf32>
    %14 = tpu.matmul %12, %13, %cst_10 {dimension_numbers = #tpu.dot_dimension_numbers<[1], [0], [0], [1], [0, 0, 1, 1], [], []>} : vector<32x128xf32>, vector<128x128xf32>, vector<32x128xf32> -> vector<32x128xf32>
    %c0_11 = arith.constant 0 : index
    %c0_12 = arith.constant 0 : index
    %15 = vector.load %arg5[%c0_11, %c0_12] : memref<1x128xf32, #tpu.memory_space<vmem>>, vector<1x128xf32>
    %16 = vector.broadcast %15 : vector<1x128xf32> to vector<32x128xf32>
    %17 = arith.addf %14, %16 : vector<32x128xf32>
    %cst_13 = arith.constant 5.000000e-01 : f32
    %18 = vector.broadcast %cst_13 : f32 to vector<32x128xf32>
    %19 = arith.mulf %18, %17 : vector<32x128xf32>
    %20 = math.tanh %19 : vector<32x128xf32>
    %cst_14 = arith.constant 1.000000e+00 : f32
    %21 = vector.broadcast %cst_14 : f32 to vector<32x128xf32>
    %22 = arith.addf %20, %21 : vector<32x128xf32>
    %cst_15 = arith.constant 5.000000e-01 : f32
    %23 = vector.broadcast %cst_15 : f32 to vector<32x128xf32>
    %24 = arith.mulf %23, %22 : vector<32x128xf32>
    %c0_16 = arith.constant 0 : index
    %c0_17 = arith.constant 0 : index
    %25 = vector.load %arg6[%c0_16, %c0_17] : memref<128x128xf32, #tpu.memory_space<vmem>>, vector<128x128xf32>
    %cst_18 = arith.constant dense<0.000000e+00> : vector<32x128xf32>
    %26 = tpu.matmul %24, %25, %cst_18 {dimension_numbers = #tpu.dot_dimension_numbers<[1], [0], [0], [1], [0, 0, 1, 1], [], []>} : vector<32x128xf32>, vector<128x128xf32>, vector<32x128xf32> -> vector<32x128xf32>
    %c0_19 = arith.constant 0 : index
    %c0_20 = arith.constant 0 : index
    %27 = vector.load %arg7[%c0_19, %c0_20] : memref<1x128xf32, #tpu.memory_space<vmem>>, vector<1x128xf32>
    %28 = vector.broadcast %27 : vector<1x128xf32> to vector<32x128xf32>
    %29 = arith.addf %26, %28 : vector<32x128xf32>
    %cst_21 = arith.constant 5.000000e-01 : f32
    %30 = vector.broadcast %cst_21 : f32 to vector<32x128xf32>
    %31 = arith.mulf %30, %29 : vector<32x128xf32>
    %32 = math.tanh %31 : vector<32x128xf32>
    %cst_22 = arith.constant 1.000000e+00 : f32
    %33 = vector.broadcast %cst_22 : f32 to vector<32x128xf32>
    %34 = arith.addf %32, %33 : vector<32x128xf32>
    %cst_23 = arith.constant 5.000000e-01 : f32
    %35 = vector.broadcast %cst_23 : f32 to vector<32x128xf32>
    %36 = arith.mulf %35, %34 : vector<32x128xf32>
    %c0_24 = arith.constant 0 : index
    %c0_25 = arith.constant 0 : index
    %37 = vector.load %arg8[%c0_24, %c0_25] : memref<128x128xf32, #tpu.memory_space<vmem>>, vector<128x128xf32>
    %cst_26 = arith.constant dense<0.000000e+00> : vector<32x128xf32>
    %38 = tpu.matmul %36, %37, %cst_26 {dimension_numbers = #tpu.dot_dimension_numbers<[1], [0], [0], [1], [0, 0, 1, 1], [], []>} : vector<32x128xf32>, vector<128x128xf32>, vector<32x128xf32> -> vector<32x128xf32>
    %c0_27 = arith.constant 0 : index
    %c0_28 = arith.constant 0 : index
    %39 = vector.load %arg9[%c0_27, %c0_28] : memref<1x128xf32, #tpu.memory_space<vmem>>, vector<1x128xf32>
    %40 = vector.broadcast %39 : vector<1x128xf32> to vector<32x128xf32>
    %41 = arith.addf %38, %40 : vector<32x128xf32>
    %cst_29 = arith.constant 5.000000e-01 : f32
    %42 = vector.broadcast %cst_29 : f32 to vector<32x128xf32>
    %43 = arith.mulf %42, %41 : vector<32x128xf32>
    %44 = math.tanh %43 : vector<32x128xf32>
    %cst_30 = arith.constant 1.000000e+00 : f32
    %45 = vector.broadcast %cst_30 : f32 to vector<32x128xf32>
    %46 = arith.addf %44, %45 : vector<32x128xf32>
    %cst_31 = arith.constant 5.000000e-01 : f32
    %47 = vector.broadcast %cst_31 : f32 to vector<32x128xf32>
    %48 = arith.mulf %47, %46 : vector<32x128xf32>
    %c0_32 = arith.constant 0 : index
    %c0_33 = arith.constant 0 : index
    %49 = vector.load %arg10[%c0_32, %c0_33] : memref<32x128xf32, #tpu.memory_space<vmem>>, vector<32x128xf32>
    tpu.vector_store %arg10[%c0_32, %c0_33], %48 {strides = array<i32>} : memref<32x128xf32, #tpu.memory_space<vmem>>, vector<32x128xf32>,
    return
  }
  func.func @transform_0(%arg0: i32) -> (i32, i32) {
    %c0_i32 = arith.constant 0 : i32
    %c0_i32_0 = arith.constant 0 : i32
    return %arg0, %c0_i32 : i32, i32
  }
  func.func @transform_1(%arg0: i32) -> (i32, i32) {
    %c0_i32 = arith.constant 0 : i32
    %c0_i32_0 = arith.constant 0 : i32
    %c0_i32_1 = arith.constant 0 : i32
    return %c0_i32, %c0_i32_0 : i32, i32
  }
  func.func @transform_2(%arg0: i32) -> (i32, i32) {
    %c0_i32 = arith.constant 0 : i32
    %c0_i32_0 = arith.constant 0 : i32
    %c0_i32_1 = arith.constant 0 : i32
    return %c0_i32, %c0_i32_0 : i32, i32
  }
  func.func @transform_3(%arg0: i32) -> (i32, i32) {
    %c0_i32 = arith.constant 0 : i32
    %c0_i32_0 = arith.constant 0 : i32
    %c0_i32_1 = arith.constant 0 : i32
    return %c0_i32, %c0_i32_0 : i32, i32
  }
  func.func @transform_4(%arg0: i32) -> (i32, i32) {
    %c0_i32 = arith.constant 0 : i32
    %c0_i32_0 = arith.constant 0 : i32
    %c0_i32_1 = arith.constant 0 : i32
    return %c0_i32, %c0_i32_0 : i32, i32
  }
  func.func @transform_5(%arg0: i32) -> (i32, i32) {
    %c0_i32 = arith.constant 0 : i32
    %c0_i32_0 = arith.constant 0 : i32
    %c0_i32_1 = arith.constant 0 : i32
    return %c0_i32, %c0_i32_0 : i32, i32
  }
  func.func @transform_6(%arg0: i32) -> (i32, i32) {
    %c0_i32 = arith.constant 0 : i32
    %c0_i32_0 = arith.constant 0 : i32
    %c0_i32_1 = arith.constant 0 : i32
    return %c0_i32, %c0_i32_0 : i32, i32
  }
  func.func @transform_7(%arg0: i32) -> (i32, i32) {
    %c0_i32 = arith.constant 0 : i32
    %c0_i32_0 = arith.constant 0 : i32
    %c0_i32_1 = arith.constant 0 : i32
    return %c0_i32, %c0_i32_0 : i32, i32
  }
  func.func @transform_8(%arg0: i32) -> (i32, i32) {
    %c0_i32 = arith.constant 0 : i32
    %c0_i32_0 = arith.constant 0 : i32
    %c0_i32_1 = arith.constant 0 : i32
    return %c0_i32, %c0_i32_0 : i32, i32
  }
  func.func @transform_9(%arg0: i32) -> (i32, i32) {
    %c0_i32 = arith.constant 0 : i32
    %c0_i32_0 = arith.constant 0 : i32
    return %arg0, %c0_i32 : i32, i32
  }
}

</mosaic_0001>

<bundles_post_ra>
// kernel: tpu_custom_call.1
= control target key start
LH: loop header
LB: loop body
LE: loop exit
PB: predicated region body
PF: predicated region fallthrough
CT: control target
= control target key end

     0   :  { %14 = vsyncpa [#allocation3], 0  ;;  %s1858_s0 = inlined_call_operand.vmem [shape: f32[64,16], index: 0, kind: input, shape index: {}]   ;;  %s1859_s1 = inlined_call_operand.vmem [shape: f32[16,128], index: 1, kind: input, shape index: {}]   ;;  %s1860_s2 = inlined_call_operand.vmem [shape: f32[1,128], index: 2, kind: input, shape index: {}]   ;;  %s1861_s3 = inlined_call_operand.hbm [shape: f32[128,128], index: 3, kind: input, shape index: {}]   ;;  %s1862_s4 = inlined_call_operand.vmem [shape: f32[1,128], index: 4, kind: input, shape index: {}]   ;;  %s1863_s5 = inlined_call_operand.hbm [shape: f32[128,128], index: 5, kind: input, shape index: {}]   ;;  %s1864_s6 = inlined_call_operand.vmem [shape: f32[1,128], index: 6, kind: input, shape index: {}]   ;;  %s1865_s7 = inlined_call_operand.hbm [shape: f32[128,128], index: 7, kind: input, shape index: {}]   ;;  %s1866_s8 = inlined_call_operand.vmem [shape: f32[1,128], index: 8, kind: input, shape index: {}]   ;;  %s1867_s9 = inlined_call_operand.hbm [shape: f32[64,128], index: 9, kind: output, shape index: {}]  }
   0x1   :  { %15 = vsyncpa [#allocation6], 0 }
   0x2   :  { %16 = vsyncpa [#allocation4], 0 }
   0x3   :  { %18 = vsyncpa [#allocation4 + $0x1], 0  ;;  %s1625_s30 = smov 0   ;;  %s1627_s10 = smov 0  }
   0x4   :  { %s1629_s11 = smov 0   ;;  %s1631_s12 = smov 0  }
   0x5 LB: > { %1876 = sst [smem:[#allocation12_spill]] %s1553_s30  ;;  %s1646_s13 = sadd.s32 4294967295, %s1565_s12   ;;  %s1565_s12 = sphi %s1631_s12, %s1895_s12   ;;  %s1561_s11 = sphi %s1629_s11, %s1897_s11   ;;  %s1557_s10 = sphi %s1627_s10, %s1899_s10   ;;  %s1553_s30 = sphi %s1625_s30, %s1898_s30  }
   0x6   : > { %1877 = sst [smem:[#allocation13_spill]] %s1561_s11  ;;  %s988_s14 = sadd.s32 4294967294, %s1565_s12  }
   0x7   : > { %s1650_s15 = sadd.s32 1, %s1565_s12   ;;  %s225_s16 = sadd.s32 1, %s1561_s11 }
   0x8   : > { %1878 = sst [smem:[#allocation14_spill]] %s1650_s15  ;;  %s222_s17 = ssub.s32 %s1565_s12, %s1650_s15 }
   0x9   : > { %p235_p0 = scmp.ne.s32.totalorder %s1561_s11, %s1557_s10  ;;  %p223_p1 = scmp.eq.s32.totalorder %s222_s17, 0 }
   0xa   : > { %p236_p2 = scmp.eq.s32.totalorder %s1646_s13, 1  ;;  %p241_p3 = scmp.ne.s32.totalorder %s1557_s10, %s1553_s30 }
   0xb   : > { %p242_p4 = scmp.eq.s32.totalorder %s988_s14, 1  ;;  %p989_p7 = scmp.ge.s32.totalorder %s1565_s12, 1 }
   0xc   : > { %s1661_s18 = scalar_select %p223_p1, %s1561_s11, %s225_s16  }
   0xd   : > { %p1663_p5 = por %p236_p2, %p235_p0  ;;  %p1667_p6 = por %p242_p4, %p241_p3 }
   0xe   : > { %1879 = sst [smem:[#allocation15_spill]] %s1661_s18  ;;  %p249_p8 = scmp.lt.s32.totalorder %s1565_s12, 3 }
   0xf   : > { %s1880_s19 = scalar_select %p1663_p5, 1, 0 }
  0x10   : > { %s1881_s20 = scalar_select %p1667_p6, 1, 0 }
  0x11   : > { %p1868_p9 = scmp.eq.s32.totalorder %s1646_s13, 0  ;;  %p1674_p10 = pnand %p989_p7, %p249_p8 }
  0x12   : > { %1882 = sst [smem:[#allocation16_spill]] %s1881_s20  ;;  %s1567_s22 = smov [#allocation5]  }
  0x13   : > { %s1883_s21 = scalar_select %p1674_p10, 1, 0 }
  0x14   : > { %p1319_p11 = pneg %p1674_p10  ;;  %s283_s23 = sshll.u32 %s1567_s22, 4  ;;  %s1680_s23 = int_to_ptr.vmem [resolvable:$true] %s283_s23 }
  0x15   : > { %s1568_s25 = smov [#allocation2]   ;;  %s1569_s27 = smov [#allocation7]  }
  0x16   : > { %p1684_p12 = pnand %p1868_p9, %p1319_p11  ;;  %s267_s26 = sshll.u32 %s1568_s25, 4  ;;  %s1688_s26 = int_to_ptr.vmem [resolvable:$true] %s267_s26 }
  0x17   : > { %s1690_s28 = sshll.u32 %s1569_s27, 4  ;;  %s1411_s16 = scalar_lea.hbm %s1863_s5, 2048  ;;  %s300_s28 = int_to_ptr.vmem [resolvable:$true] %s1690_s28 }
  0x18   : > { %p1412_p13 = scmp.ne.s32.totalorder %s1863_s5, %s1411_s16  ;;  %p1700_p0 = pneg %p1684_p12 }
  0x19   : > { %p1418_p3 = scmp.lt.u32.totalorder %s1411_s16, %s1863_s5 }
  0x1a   : > { %p1414_p1 = pnand %p1700_p0, %p1412_p13 }
  0x1c   : > { %p1415_p2 = pneg %p1414_p1 }
  0x1e   : > { %p1420_p4 = pnand %p1418_p3, %p1415_p2 }
  0x20   : > { %1423 = shalt.err (!%p1420_p4)
}
  0x21   : > { %s1424_s29 = scalar_lea.vmem %s1680_s23, 2048  ;;  %p1432_p9 = scmp.lt.s32.totalorder %s1680_s23, %s1680_s23 }
  0x22   : > { %p1425_p7 = scmp.ne.s32.totalorder %s1680_s23, %s1424_s29  ;;  %p1433_p6 = scmp.lt.s32.totalorder %s1424_s29, %s1424_s29 }
  0x24   : > { %p1427_p8 = pnand %p1425_p7, %p1700_p0  ;;  %p1434_p13 = por %p1433_p6, %p1432_p9 }
  0x26   : > { %p1428_p11 = pneg %p1427_p8 }
  0x28   : > { %p1435_p1 = pnand %p1434_p13, %p1428_p11 }
  0x2a   : > { %1438 = shalt.err (!%p1435_p1)
}
  0x2b   : > { %s1570_s14 = smov 128   ;;  %s1571_s16 = smov 8  }
  0x2c   : > { %1325 = dma.hbm_to_vmem [thread:$0]  (!%p1684_p12), %s1863_s5, 2048, %s1680_s23, [#allocation6], %s1570_s14, %s1570_s14, %s1571_s16  }
  0x2d   : > { %s1439_s29 = scalar_lea.hbm %s1861_s3, 2048 }
  0x2e   : > { %p1440_p6 = scmp.ne.s32.totalorder %s1861_s3, %s1439_s29  ;;  %p1446_p3 = scmp.lt.u32.totalorder %s1439_s29, %s1861_s3 }
  0x30   : > { %p1442_p9 = pnand %p1440_p6, %p1700_p0 }
  0x32   : > { %p1443_p2 = pneg %p1442_p9 }
  0x34   : > { %p1448_p4 = pnand %p1446_p3, %p1443_p2 }
  0x36   : > { %1451 = shalt.err (!%p1448_p4)
}
  0x37   : > { %s1452_s23 = scalar_lea.vmem %s1688_s26, 2048  ;;  %p1460_p13 = scmp.lt.s32.totalorder %s1688_s26, %s1688_s26 }
  0x38   : > { %p1453_p7 = scmp.ne.s32.totalorder %s1688_s26, %s1452_s23  ;;  %p1461_p1 = scmp.lt.s32.totalorder %s1452_s23, %s1452_s23 }
  0x3a   : > { %p1455_p8 = pnand %p1453_p7, %p1700_p0  ;;  %p1462_p6 = por %p1461_p1, %p1460_p13 }
  0x3c   : > { %p1456_p11 = pneg %p1455_p8 }
  0x3e   : > { %p1463_p9 = pnand %p1462_p6, %p1456_p11 }
  0x40   : > { %1466 = shalt.err (!%p1463_p9)
}
  0x41   : > { %1322 = dma.hbm_to_vmem [thread:$0]  (!%p1684_p12), %s1861_s3, 2048, %s1688_s26, [#allocation3], %s1570_s14, %s1570_s14, %s1571_s16  }
  0x42   : > { %s1467_s17 = scalar_lea.hbm %s1865_s7, 2048 }
  0x43   : > { %p1468_p2 = scmp.ne.s32.totalorder %s1865_s7, %s1467_s17  ;;  %p1474_p7 = scmp.lt.u32.totalorder %s1467_s17, %s1865_s7 }
  0x45   : > { %p1470_p3 = pnand %p1468_p2, %p1700_p0 }
  0x47   : > { %p1471_p4 = pneg %p1470_p3 }
  0x49   : > { %p1476_p8 = pnand %p1474_p7, %p1471_p4 }
  0x4b   : > { %1479 = shalt.err (!%p1476_p8)
}
  0x4c   : > { %s1480_s23 = scalar_lea.vmem %s300_s28, 2048  ;;  %p1488_p6 = scmp.lt.s32.totalorder %s300_s28, %s300_s28 }
  0x4d   : > { %p1481_p11 = scmp.ne.s32.totalorder %s300_s28, %s1480_s23  ;;  %p1489_p9 = scmp.lt.s32.totalorder %s1480_s23, %s1480_s23 }
  0x4f   : > { %p1483_p13 = pnand %p1481_p11, %p1700_p0  ;;  %p1490_p5 = por %p1489_p9, %p1488_p6 }
  0x51   : > { %p1484_p1 = pneg %p1483_p13 }
  0x53   : > { %p1491_p10 = pnand %p1490_p5, %p1484_p1 }
  0x55   : > { %1494 = shalt.err (!%p1491_p10)
}
  0x56   : > { %1328 = dma.hbm_to_vmem [thread:$0]  (!%p1684_p12), %s1865_s7, 2048, %s300_s28, [#allocation6], %s1570_s14, %s1570_s14, %s1571_s16  }
  0x57   : > { %p1886_p2 = scmp.ne.s32.totalorder %s1883_s21, 0 }
  0x58   : > { %p1887_p0 = scmp.eq.s32.totalorder (!%p1886_p2), %s1646_s13, 0 }
  0x59   : > { %327 = sbr.rel (%p1886_p2) target bundleno = 1058 (0x422), region = 56 }
  0x60   : > { %1540 = dma.done.wait (%p1887_p0), [#allocation3], 2048   ;;  %p1888_p3 = pmov %p1887_p0 }
  0x61   : > { %p1889_p5 = pmov %p1887_p0 }
  0x62   : > { %1542 = vsyncadd (%p1888_p3), [#allocation3], 4294965248 }
  0x63   : > { %1544 = dma.done.wait (%p1889_p5), [#allocation6], 4096   ;;  %p1890_p10 = pmov %p1887_p0 }
  0x64   : > { %s999_s18 = sshll.u32 %s1646_s13, 2  ;;  %vm391_vm0 = vcmask 130048   ;;  %v382_v0 = vld [vmem:[%s1859_s1] sm:$0xff]  ;;  %v383_v1 = vld [vmem:[%s1859_s1 + $0x8] sm:$0xff]  ;;  %v507_v6 = vld [vmem:[#allocation2 + $0x10] sm:$0xff]  ;;  %p1891_p7 = scmp.ne.s32.totalorder %s1880_s19, 0 }
  0x65   : > { %1546 = vsyncadd (%p1890_p10), [#allocation6], 4294963200  ;;  %p372_p4 = scmp.lt.s32.totalorder %s999_s18, 7  ;;  %v1205_v3 = vpack.c.bf16 %v383_v1, %v382_v0  ;;  %v505_v4 = vld [vmem:[#allocation2] sm:$0xff]  ;;  %v506_v5 = vld [vmem:[#allocation2 + $0x8] sm:$0xff]  ;;  %s1572_s17 = smov [#allocation8]  }
  0x66   : > { %v1209_v7 = vpack.c.bf16 %v506_v5, %v505_v4  ;;  %v508_v8 = vld [vmem:[#allocation2 + $0x18] sm:$0xff]  ;;  %v509_v11 = vld [vmem:[#allocation2 + $0x20] sm:$0xff]  ;;  %v510_v12 = vld [vmem:[#allocation2 + $0x28] sm:$0xff]  ;;  %s1499_s22 = sshll.u32 %s1572_s17, 4  ;;  %s1500_s22 = int_to_ptr.vmem [resolvable:$false] %s1499_s22 }
  0x67   : > { %s1901_s18 = smov (!%p372_p4, %s999_s18), 7  ;;  %1206 = vmatprep.subr.bf16.mxu0 %v1205_v3  ;;  %v1213_v10 = vpack.c.bf16 %v508_v8, %v507_v6  ;;  %v1217_v14 = vpack.c.bf16 %v510_v12, %v509_v11  ;;  %v511_v16 = vld [vmem:[#allocation2 + $0x30] sm:$0xff]  ;;  %v512_v17 = vld [vmem:[#allocation2 + $0x38] sm:$0xff]  ;;  %v513_v19 = vld [vmem:[#allocation2 + $0x40] sm:$0xff]  ;;  %s1501_s25 = scalar_lea.vmem %s1500_s22, 1024 }
  0x68   : > { %s1000_s24 = sshll.u32 %s1901_s18, 3  ;;  %1208 = vmatpush3.bf16.msra.mxu0 %v1205_v3  ;;  %1210 = vmatprep.subr.bf16.mxu1 %v1209_v7  ;;  %v1221_v18 = vpack.c.bf16 %v512_v17, %v511_v16  ;;  %v514_v20 = vld [vmem:[#allocation2 + $0x48] sm:$0xff]  ;;  %v515_v22 = vld [vmem:[#allocation2 + $0x50] sm:$0xff]  ;;  %v516_v23 = vld [vmem:[#allocation2 + $0x58] sm:$0xff]  ;;  %s368_s18 = sand.u32 1, %s1557_s10  }
  0x69   : > { %s375_s14 = scalar_lea.vmem %s1858_s0, %s1000_s24  ;;  %1212 = vmatpush3.bf16.msra.mxu1 %v1209_v7  ;;  %v1225_v21 = vpack.c.bf16 %v514_v20, %v513_v19  ;;  %v1229_v24 = vpack.c.bf16 %v516_v23, %v515_v22  ;;  %v517_v25 = vld [vmem:[#allocation2 + $0x60] sm:$0xff]  ;;  %v518_v26 = vld [vmem:[#allocation2 + $0x68] sm:$0xff]  ;;  %v519_v28 = vld [vmem:[#allocation2 + $0x70] sm:$0xff]  ;;  %s998_s24 = sshll.u32 %s368_s18, 5 }
  0x6a   : > { %v378_v2 = vld [vmem:[%s375_s14] sm:$0xff]  ;;  %v379_v9 = vld [vmem:[%s375_s14 + $0x8] sm:$0xff]  ;;  %v380_v13 = vld [vmem:[%s375_s14 + $0x10] sm:$0xff]  ;;  %1214 = vmatprep.subr.bf16.mxu1 %v1213_v10  ;;  %v1233_v27 = vpack.c.bf16 %v518_v26, %v517_v25  ;;  %s370_s21 = scalar_lea.vmem [#allocation8], %s998_s24 }
  0x6b   : > { %1085 = vmatprep.mubr.msk.f32.mxu0 %vm391_vm0, %v378_v2  ;;  %v381_v15 = vld [vmem:[%s375_s14 + $0x18] sm:$0xff]  ;;  %v629_v31 = vld [vmem:[#allocation5] sm:$0xff]  ;;  %v630_v32 = vld [vmem:[#allocation5 + $0x8] sm:$0xff]  ;;  %s895_s28 = sshll.u32 %s370_s21, 4  ;;  %s1014_s14 = sshll.u32 %s1646_s13, 9  ;;  %s1810_s28 = int_to_ptr.vmem [resolvable:$true] %s895_s28 }
  0x6c   : > { %1086 = vmatmul.mubr.msk.f32.vlgmr.msra.gmra.mrb[0].mxu0 %vm391_vm0, %v379_v9  ;;  %v520_v29 = vld [vmem:[#allocation2 + $0x78] sm:$0xff]  ;;  %v631_v33 = vld [vmem:[#allocation5 + $0x10] sm:$0xff]  ;;  %v1241_v34 = vpack.c.bf16 %v630_v32, %v629_v31  ;;  %v633_v37 = vld [vmem:[#allocation5 + $0x20] sm:$0xff]  ;;  %s1815_s15 = scalar_lea.hbm %s1867_s9, %s1014_s14  ;;  %s1817_s13 = scalar_lea.sflag [#allocation4], %s368_s18 }
  0x6d   : > { %1088 = vmatprep.mubr.msk.f32.mxu0 %vm391_vm0, %v380_v13  ;;  %1216 = vmatpush3.bf16.msra.mxu1 %v1213_v10  ;;  %v1237_v30 = vpack.c.bf16 %v520_v29, %v519_v28  ;;  %v632_v35 = vld [vmem:[#allocation5 + $0x18] sm:$0xff]  ;;  %v634_v38 = vld [vmem:[#allocation5 + $0x28] sm:$0xff]  ;;  %v1001_v40 = vld [vmem:[%s1860_s2] ss:$0 sm:$0xff]  ;;  %s1495_s20 = scalar_lea.vmem %s1810_s28, 512  ;;  %p1502_p13 = scmp.lt.s32.totalorder %s1810_s28, %s1500_s22 }
  0x6e   : > { %1218 = vmatprep.subr.bf16.mxu1 %v1217_v14  ;;  %v1245_v36 = vpack.c.bf16 %v632_v35, %v631_v33  ;;  %1242 = vmatprep.subr.bf16.mxu0 %v1241_v34  ;;  %v1249_v39 = vpack.c.bf16 %v634_v38, %v633_v37  ;;  %v635_v1 = vld [vmem:[#allocation5 + $0x30] sm:$0xff]  ;;  %v636_v2 = vld [vmem:[#allocation5 + $0x38] sm:$0xff]  ;;  %v637_v4 = vld [vmem:[#allocation5 + $0x40] sm:$0xff]  ;;  %p1496_p12 = scmp.ne.s32.totalorder %s1810_s28, %s1495_s20  ;;  %p1503_p1 = scmp.lt.s32.totalorder %s1501_s25, %s1495_s20 }
  0x6f   : > { %1244 = vmatpush3.bf16.msra.mxu0 %v1241_v34  ;;  %v1253_v3 = vpack.c.bf16 %v636_v2, %v635_v1  ;;  %v638_v5 = vld [vmem:[#allocation5 + $0x48] sm:$0xff]  ;;  %v639_v7 = vld [vmem:[#allocation5 + $0x50] sm:$0xff]  ;;  %v640_v8 = vld [vmem:[#allocation5 + $0x58] sm:$0xff] }
  0x70   : > { %1089 = vmatmul.mubr.msk.f32.gmra.mrb[2].mxu0 %vm391_vm0, %v381_v15  ;;  %1246 = vmatprep.subr.bf16.mxu0 %v1245_v36  ;;  %v1257_v6 = vpack.c.bf16 %v638_v5, %v637_v4  ;;  %v1261_v9 = vpack.c.bf16 %v640_v8, %v639_v7  ;;  %v641_v10 = vld [vmem:[#allocation5 + $0x60] sm:$0xff]  ;;  %v642_v11 = vld [vmem:[#allocation5 + $0x68] sm:$0xff]  ;;  %v643_v13 = vld [vmem:[#allocation5 + $0x70] sm:$0xff]  ;;  %p1497_p8 = pnand %p1496_p12, %p1891_p7  ;;  %p1504_p6 = por %p1503_p1, %p1502_p13 }
  0x71   : > { %1220 = vmatpush3.bf16.msra.mxu1 %v1217_v14  ;;  %v1265_v12 = vpack.c.bf16 %v642_v11, %v641_v10  ;;  %v644_v14 = vld [vmem:[#allocation5 + $0x78] sm:$0xff]  ;;  %v753_v16 = vld [vmem:[#allocation7] sm:$0xff]  ;;  %v754_v17 = vld [vmem:[#allocation7 + $0x8] sm:$0xff] }
  0x72   : > { %1222 = vmatprep.subr.bf16.mxu1 %v1221_v18  ;;  %v1269_v15 = vpack.c.bf16 %v644_v14, %v643_v13  ;;  %v1273_v19 = vpack.c.bf16 %v754_v17, %v753_v16  ;;  %v756_v20 = vld [vmem:[#allocation7 + $0x18] sm:$0xff]  ;;  %v757_v22 = vld [vmem:[#allocation7 + $0x20] sm:$0xff]  ;;  %v758_v23 = vld [vmem:[#allocation7 + $0x28] sm:$0xff]  ;;  %p1498_p11 = pneg %p1497_p8 }
  0x73   : > { %1248 = vmatpush3.bf16.msra.mxu0 %v1245_v36  ;;  %v1006_v25 = vld [vmem:[%s1862_s4] ss:$0 sm:$0xff] }
  0x74   : > { %1250 = vmatprep.subr.bf16.mxu0 %v1249_v39  ;;  %v1007_v1 = vld [vmem:[%s1864_s6] ss:$0 sm:$0xff]  ;;  %p1505_p9 = pnand %p1504_p6, %p1498_p11 }
  0x75   : > { %1224 = vmatpush3.bf16.msra.mxu1 %v1221_v18  ;;  %v755_v18 = vld [vmem:[#allocation7 + $0x10] sm:$0xff] }
  0x76   : > { %1226 = vmatprep.subr.bf16.mxu1 %v1225_v21 }
  0x77   : > { %1252 = vmatpush3.bf16.msra.mxu0 %v1249_v39 }
  0x78   : > { %1254 = vmatprep.subr.bf16.mxu0 %v1253_v3 }
  0x79   : > { %1228 = vmatpush3.bf16.msra.mxu1 %v1225_v21  ;;  %v1277_v21 = vpack.c.bf16 %v756_v20, %v755_v18 }
  0x7a   : > { %1230 = vmatprep.subr.bf16.mxu1 %v1229_v24 }
  0x7b   : > { %1256 = vmatpush3.bf16.msra.mxu0 %v1253_v3 }
  0x7c   : > { %1258 = vmatprep.subr.bf16.mxu0 %v1257_v6 }
  0x7d   : > { %1232 = vmatpush3.bf16.msra.mxu1 %v1229_v24  ;;  %v1281_v24 = vpack.c.bf16 %v758_v23, %v757_v22 }
  0x7e   : > { %1234 = vmatprep.subr.bf16.mxu1 %v1233_v27 }
  0x7f   : > { %1260 = vmatpush3.bf16.msra.mxu0 %v1257_v6 }
  0x80   : > { %1262 = vmatprep.subr.bf16.mxu0 %v1261_v9 }
  0x81   : > { %1236 = vmatpush3.bf16.msra.mxu1 %v1233_v27 }
  0x82   : > { %1238 = vmatprep.subr.bf16.mxu1 %v1237_v30 }
  0x83   : > { %1264 = vmatpush3.bf16.msra.mxu0 %v1261_v9 }
  0x84   : > { %1266 = vmatprep.subr.bf16.mxu0 %v1265_v12 }
  0x85   : > { %1240 = vmatpush3.bf16.msra.mxu1 %v1237_v30 }
  0x86   : > { %1274 = vmatprep.subr.bf16.mxu1 %v1273_v19 }
  0x87   : > { %1268 = vmatpush3.bf16.msra.mxu0 %v1265_v12 }
  0x88   : > { %1270 = vmatprep.subr.bf16.mxu0 %v1269_v15 }
  0x8b   : > { %1272 = vmatpush3.bf16.msra.mxu0 %v1269_v15 }
 0x13f   : > { %v1087_v41 = vpop.f32.mrb[0].mxu0 }
 0x140   : > { %v476_v42 = vadd.f32 %v1087_v41, %v1001_v40  ;;  %v470_v43 = vpop.f32.mrb[1].mxu0 }
 0x141   : > { %v471_v44 = vadd.f32 %v1001_v40, %v470_v43 }
 0x142   : > { %v490_v45 = vmul.f32 0.5, %v476_v42 }
 0x143   : > { %v489_v46 = vmul.f32 0.5, %v471_v44  ;;  %v1090_v47 = vpop.f32.mrb[2].mxu0 }
 0x144   : > { %1379 = vtanh.f32 %v490_v45  ;;  %v486_v48 = vadd.f32 %v1090_v47, %v1001_v40  ;;  %v480_v49 = vpop.f32.mrb[3].mxu0 }
 0x145   : > { %1381 = vtanh.f32 %v489_v46  ;;  %v481_v50 = vadd.f32 %v1001_v40, %v480_v49 }
 0x146   : > { %v492_v51 = vmul.f32 0.5, %v486_v48 }
 0x147   : > { %v491_v52 = vmul.f32 0.5, %v481_v50  ;;  %v759_v50 = vld [vmem:[#allocation7 + $0x30] sm:$0xff] }
 0x148   : > { %1383 = vtanh.f32 %v492_v51  ;;  %v760_v51 = vld [vmem:[#allocation7 + $0x38] sm:$0xff] }
 0x149   : > { %1385 = vtanh.f32 %v491_v52  ;;  %v1285_v52 = vpack.c.bf16 %v760_v51, %v759_v50 }
 0x14e   : > { %v1380_v53 = vpop.eup %1379 }
 0x14f   : > { %v1382_v54 = vpop.eup %1381  ;;  %v498_v55 = vadd.f32 1.0, %v1380_v53  ;;  %v761_v53 = vld [vmem:[#allocation7 + $0x40] sm:$0xff] }
 0x150   : > { %v497_v56 = vadd.f32 1.0, %v1382_v54  ;;  %v762_v54 = vld [vmem:[#allocation7 + $0x48] sm:$0xff] }
 0x151   : > { %v502_v61 = vmul.f32 0.5, %v498_v55  ;;  %v1289_v55 = vpack.c.bf16 %v762_v54, %v761_v53 }
 0x152   : > { %v1384_v57 = vpop.eup %1383  ;;  %v501_v58 = vmul.f32 0.5, %v497_v56  ;;  %v763_v56 = vld [vmem:[#allocation7 + $0x50] sm:$0xff] }
 0x153   : > { %v1386_v59 = vpop.eup %1385  ;;  %v500_v60 = vadd.f32 1.0, %v1384_v57  ;;  %v764_v57 = vld [vmem:[#allocation7 + $0x58] sm:$0xff] }
 0x154   : > { %v499_v62 = vadd.f32 1.0, %v1386_v59  ;;  %1123 = vmatprep.mubr.f32.mxu1 %v501_v58  ;;  %v1293_v58 = vpack.c.bf16 %v764_v57, %v763_v56  ;;  %v765_v59 = vld [vmem:[#allocation7 + $0x60] sm:$0xff] }
 0x155   : > { %1124 = vmatmul.mubr.f32.vlgmr.msra.gmra.mrb[0].mxu1 %v502_v61  ;;  %v504_v0 = vmul.f32 0.5, %v500_v60  ;;  %v766_v60 = vld [vmem:[#allocation7 + $0x68] sm:$0xff] }
 0x156   : > { %v503_v63 = vmul.f32 0.5, %v499_v62  ;;  %1276 = vmatpush3.bf16.msra.mxu1 %v1273_v19  ;;  %v1297_v61 = vpack.c.bf16 %v766_v60, %v765_v59  ;;  %v767_v62 = vld [vmem:[#allocation7 + $0x70] sm:$0xff] }
 0x157   : > { %1278 = vmatprep.subr.bf16.mxu1 %v1277_v21 }
 0x158   : > { %1126 = vmatprep.mubr.f32.mxu1 %v503_v63  ;;  %v768_v63 = vld [vmem:[#allocation7 + $0x78] sm:$0xff] }
 0x159   : > { %1127 = vmatmul.mubr.f32.gmra.mrb[2].mxu1 %v504_v0  ;;  %v1301_v0 = vpack.c.bf16 %v768_v63, %v767_v62 }
 0x15a   : > { %1280 = vmatpush3.bf16.msra.mxu1 %v1277_v21 }
 0x15b   : > { %1282 = vmatprep.subr.bf16.mxu1 %v1281_v24 }
 0x15e   : > { %1284 = vmatpush3.bf16.msra.mxu1 %v1281_v24 }
 0x15f   : > { %1286 = vmatprep.subr.bf16.mxu1 %v1285_v52 }
 0x162   : > { %1288 = vmatpush3.bf16.msra.mxu1 %v1285_v52 }
 0x163   : > { %1290 = vmatprep.subr.bf16.mxu1 %v1289_v55 }
 0x166   : > { %1292 = vmatpush3.bf16.msra.mxu1 %v1289_v55 }
 0x167   : > { %1294 = vmatprep.subr.bf16.mxu1 %v1293_v58 }
 0x16a   : > { %1296 = vmatpush3.bf16.msra.mxu1 %v1293_v58 }
 0x16b   : > { %1298 = vmatprep.subr.bf16.mxu1 %v1297_v61 }
 0x16e   : > { %1300 = vmatpush3.bf16.msra.mxu1 %v1297_v61 }
 0x16f   : > { %1302 = vmatprep.subr.bf16.mxu1 %v1301_v0 }
 0x172   : > { %1304 = vmatpush3.bf16.msra.mxu1 %v1301_v0 }
 0x228   : > { %v1125_v26 = vpop.f32.mrb[0].mxu1 }
 0x229   : > { %v600_v27 = vadd.f32 %v1125_v26, %v1006_v25  ;;  %v594_v28 = vpop.f32.mrb[1].mxu1  ;;  %v1008_v26 = vld [vmem:[%s1866_s8] ss:$0 sm:$0xff] }
 0x22a   : > { %v595_v29 = vadd.f32 %v1006_v25, %v594_v28 }
 0x22b   : > { %v614_v30 = vmul.f32 0.5, %v600_v27 }
 0x22c   : > { %v613_v31 = vmul.f32 0.5, %v595_v29  ;;  %v1128_v32 = vpop.f32.mrb[2].mxu1 }
 0x22d   : > { %1387 = vtanh.f32 %v614_v30  ;;  %v610_v33 = vadd.f32 %v1128_v32, %v1006_v25  ;;  %v604_v34 = vpop.f32.mrb[3].mxu1 }
 0x22e   : > { %1389 = vtanh.f32 %v613_v31  ;;  %v605_v35 = vadd.f32 %v1006_v25, %v604_v34 }
 0x22f   : > { %v616_v36 = vmul.f32 0.5, %v610_v33 }
 0x230   : > { %v615_v37 = vmul.f32 0.5, %v605_v35 }
 0x231   : > { %1391 = vtanh.f32 %v616_v36 }
 0x232   : > { %1393 = vtanh.f32 %v615_v37 }
 0x237   : > { %v1388_v38 = vpop.eup %1387 }
 0x238   : > { %v1390_v39 = vpop.eup %1389  ;;  %v622_v40 = vadd.f32 1.0, %v1388_v38 }
 0x239   : > { %v621_v41 = vadd.f32 1.0, %v1390_v39 }
 0x23a   : > { %v626_v45 = vmul.f32 0.5, %v622_v40 }
 0x23b   : > { %v1392_v42 = vpop.eup %1391  ;;  %v625_v43 = vmul.f32 0.5, %v621_v41 }
 0x23c   : > { %v1394_v44 = vpop.eup %1393  ;;  %v624_v46 = vadd.f32 1.0, %v1392_v42 }
 0x23d   : > { %v623_v47 = vadd.f32 1.0, %v1394_v44  ;;  %1161 = vmatprep.mubr.f32.mxu0 %v625_v43 }
 0x23e   : > { %1162 = vmatmul.mubr.f32.vlgmr.msra.gmra.mrb[4].mxu0 %v626_v45  ;;  %v628_v49 = vmul.f32 0.5, %v624_v46 }
 0x23f   : > { %v627_v48 = vmul.f32 0.5, %v623_v47 }
 0x241   : > { %1164 = vmatprep.mubr.f32.mxu0 %v627_v48 }
 0x242   : > { %1165 = vmatmul.mubr.f32.gmra.mrb[6].mxu0 %v628_v49 }
 0x311   : > { %v1163_v2 = vpop.f32.mrb[4].mxu0 }
 0x312   : > { %v724_v3 = vadd.f32 %v1163_v2, %v1007_v1  ;;  %v718_v4 = vpop.f32.mrb[5].mxu0 }
 0x313   : > { %v719_v5 = vadd.f32 %v1007_v1, %v718_v4 }
 0x314   : > { %v738_v6 = vmul.f32 0.5, %v724_v3 }
 0x315   : > { %v737_v7 = vmul.f32 0.5, %v719_v5  ;;  %v1166_v8 = vpop.f32.mrb[6].mxu0 }
 0x316   : > { %1395 = vtanh.f32 %v738_v6  ;;  %v734_v9 = vadd.f32 %v1166_v8, %v1007_v1  ;;  %v728_v10 = vpop.f32.mrb[7].mxu0 }
 0x317   : > { %1397 = vtanh.f32 %v737_v7  ;;  %v729_v11 = vadd.f32 %v1007_v1, %v728_v10 }
 0x318   : > { %v740_v12 = vmul.f32 0.5, %v734_v9 }
 0x319   : > { %v739_v13 = vmul.f32 0.5, %v729_v11 }
 0x31a   : > { %1399 = vtanh.f32 %v740_v12 }
 0x31b   : > { %1401 = vtanh.f32 %v739_v13 }
 0x320   : > { %v1396_v14 = vpop.eup %1395 }
 0x321   : > { %v1398_v15 = vpop.eup %1397  ;;  %v746_v16 = vadd.f32 1.0, %v1396_v14 }
 0x322   : > { %v745_v17 = vadd.f32 1.0, %v1398_v15 }
 0x323   : > { %v750_v21 = vmul.f32 0.5, %v746_v16 }
 0x324   : > { %v1400_v18 = vpop.eup %1399  ;;  %v749_v19 = vmul.f32 0.5, %v745_v17 }
 0x325   : > { %v1402_v20 = vpop.eup %1401  ;;  %v748_v22 = vadd.f32 1.0, %v1400_v18 }
 0x326   : > { %v747_v23 = vadd.f32 1.0, %v1402_v20  ;;  %1199 = vmatprep.mubr.f32.mxu1 %v749_v19 }
 0x327   : > { %1200 = vmatmul.mubr.f32.vlgmr.msra.gmra.mrb[4].mxu1 %v750_v21  ;;  %v752_v25 = vmul.f32 0.5, %v748_v22 }
 0x328   : > { %v751_v24 = vmul.f32 0.5, %v747_v23 }
 0x32a   : > { %1202 = vmatprep.mubr.f32.mxu1 %v751_v24 }
 0x32b   : > { %1203 = vmatmul.mubr.f32.gmra.mrb[6].mxu1 %v752_v25 }
 0x3fa   : > { %v1201_v27 = vpop.f32.mrb[4].mxu1 }
 0x3fb   : > { %v848_v28 = vadd.f32 %v1201_v27, %v1008_v26  ;;  %v842_v29 = vpop.f32.mrb[5].mxu1 }
 0x3fc   : > { %v843_v30 = vadd.f32 %v1008_v26, %v842_v29 }
 0x3fd   : > { %v862_v31 = vmul.f32 0.5, %v848_v28 }
 0x3fe   : > { %v861_v32 = vmul.f32 0.5, %v843_v30  ;;  %v1204_v33 = vpop.f32.mrb[6].mxu1 }
 0x3ff   : > { %1403 = vtanh.f32 %v862_v31  ;;  %v858_v34 = vadd.f32 %v1204_v33, %v1008_v26  ;;  %v852_v35 = vpop.f32.mrb[7].mxu1 }
 0x400   : > { %1405 = vtanh.f32 %v861_v32  ;;  %v853_v36 = vadd.f32 %v1008_v26, %v852_v35 }
 0x401   : > { %v864_v37 = vmul.f32 0.5, %v858_v34 }
 0x402   : > { %v863_v38 = vmul.f32 0.5, %v853_v36 }
 0x403   : > { %1407 = vtanh.f32 %v864_v37 }
 0x404   : > { %1409 = vtanh.f32 %v863_v38 }
 0x409   : > { %v1404_v39 = vpop.eup %1403 }
 0x40a   : > { %v1406_v40 = vpop.eup %1405  ;;  %v870_v41 = vadd.f32 1.0, %v1404_v39 }
 0x40b   : > { %v869_v42 = vadd.f32 1.0, %v1406_v40 }
 0x40c   : > { %v874_v43 = vmul.f32 0.5, %v870_v41 }
 0x40d   : > { %v1408_v44 = vpop.eup %1407  ;;  %v873_v45 = vmul.f32 0.5, %v869_v42 }
 0x40e   : > { %v1410_v46 = vpop.eup %1409  ;;  %878 = vst [vmem:[%s370_s21 + $0x8] sm:$0xff] %v874_v43  ;;  %v872_v47 = vadd.f32 1.0, %v1408_v44 }
 0x40f   : > { %877 = vst [vmem:[%s370_s21] sm:$0xff] %v873_v45  ;;  %v871_v48 = vadd.f32 1.0, %v1410_v46 }
 0x410   : > { %v876_v49 = vmul.f32 0.5, %v872_v47 }
 0x411   : > { %v875_v50 = vmul.f32 0.5, %v871_v48 }
 0x412   : > { %880 = vst [vmem:[%s370_s21 + $0x18] sm:$0xff] %v876_v49 }
 0x413   : > { %879 = vst [vmem:[%s370_s21 + $0x10] sm:$0xff] %v875_v50 }
 0x414   : > { %1508 = shalt.err (!%p1505_p9)
}
 0x415   : > { %s1509_s27 = scalar_lea.hbm %s1815_s15, 512  ;;  %s1513_s26 = scalar_lea.hbm %s1867_s9, 1024 }
 0x416   : > { %p1510_p2 = scmp.ne.s32.totalorder %s1815_s15, %s1509_s27  ;;  %p1514_p5 = scmp.lt.u32.totalorder %s1815_s15, %s1867_s9 }
 0x417   : > { %p1515_p10 = scmp.lt.u32.totalorder %s1513_s26, %s1509_s27  ;;  %p1517_p12 = scmp.lt.u32.totalorder %s1509_s27, %s1815_s15 }
 0x418   : > { %p1511_p0 = pnand %p1510_p2, %p1891_p7 }
 0x419   : > { %p1516_p4 = por %p1515_p10, %p1514_p5 }
 0x41a   : > { %p1512_p3 = pneg %p1511_p0 }
 0x41b   : > { %p1518_p8 = por %p1517_p12, %p1516_p4 }
 0x41d   : > { %p1519_p11 = pnand %p1518_p8, %p1512_p3 }
 0x41f   : > { %1522 = shalt.err (!%p1519_p11)
}
 0x420   : > { %s1573_s24 = smov 128   ;;  %s1574_s21 = smov 8  }
 0x421   : > { %1317 = dma.vmem_to_hbm [thread:$0]  (%p1891_p7), %s1810_s28, 512, %s1815_s15, %s1817_s13, %s1573_s24, %s1573_s24, %s1574_s21  }
 0x422 PF: > { %s1892_s14 = sld [smem:[#allocation12_spill]]  ;;  %s1893_s16 = sld [smem:[#allocation16_spill]] }
 0x423   : > { %p1339_p13 = scmp.ge.s32.totalorder %s1565_s12, 2 }
 0x428   : > { %s910_s11 = sand.u32 1, %s1892_s14   ;;  %p1894_p1 = scmp.ne.s32.totalorder %s1893_s16, 0 }
 0x429   : > { %s911_s20 = scalar_lea.sflag [#allocation4], %s910_s11 }
 0x42a   : > { %p1330_p6 = pnand %p1339_p13, %p1894_p1 }
 0x42c   : > { %1548 = dma.done.wait (!%p1330_p6), %s911_s20, 512  }
 0x42d   : > { %1550 = vsyncadd (!%p1330_p6), %s911_s20, 4294966784  ;;  %s1895_s12 = sld [smem:[#allocation14_spill]]  ;;  %s1896_s17 = sld [smem:[#allocation13_spill]] }
 0x42e   : > { %s1897_s11 = sld [smem:[#allocation15_spill]]  ;;  %s1898_s30 = smov %s1557_s10 }
 0x433   : > { %p21_p9 = scmp.ge.s32.totalorder %s1895_s12, 4   ;;  %s1899_s10 = smov %s1896_s17 }
 0x435   :  { %23 = sbr.rel (!%p21_p9) target bundleno = 5 (0x5), region = 104 }
 0x43c   :  { %916 = vsyncpa [#allocation3], 1 }
 0x43d   :  { %918 = vsyncpa [#allocation3 + $0x1], 1 }
 0x43e   :  { %919 = vsyncpa [#allocation6], 1 }
 0x43f   :  { %920 = vsyncpa [#allocation4], 1 }
 0x440   :  { %922 = vsyncpa [#allocation4 + $0x1], 1 }

</bundles_post_ra>
